<compile_context>
chip_gen: v6e
topology: v6e:2x2x1
jax: 0.10.0
libtpu: 0.0.40
codegen_flags: <defaults>
</compile_context>

<pallas_src>
import jax
import jax.numpy as jnp
import numpy as np
from jax import lax
from jax.experimental import pallas as pl
from jax.experimental.pallas import tpu as pltpu


# --------------------------------------------------------------------------- #
# Kernel
# --------------------------------------------------------------------------- #
def _make_kernel(num_depots, scale_supply_by_demand):
    nd = num_depots

    def kernel(coords_ref, aux_ref, demc_ref, swd_ref, wp_ref,
               node_ref, sku_ref, edge_ref):
        TB, N, K = swd_ref.shape
        D = wp_ref.shape[1]

        swd = swd_ref[...]                       # [TB, N, K]
        coords = coords_ref[...]                 # [TB, N, 2]
        x = coords[..., 0:1]                     # [TB, N, 1]
        y = coords[..., 1:2]                     # [TB, N, 1]
        aux = aux_ref[...]                       # [TB, 1, K] demand row (or 1/cap row)
        dem_col = demc_ref[...]                  # [TB, K, 1] demand / capacity (exact)

        # Packed weights [8, D]:
        #   rows 0-1: W_depot ; rows 2-4: W_shelf (row 4 pre-scaled by 1/num_skus)
        #   rows 5-6: W_sku (row 6 pre-scaled by 1/num_shelves) ; row 7: pad
        wp = wp_ref[...]
        wd0 = wp[0:1, :][None]; wd1 = wp[1:2, :][None]                     # [1,1,D]
        ws0 = wp[2:3, :][None]; ws1 = wp[3:4, :][None]; ws2 = wp[4:5, :][None]
        wk0 = wp[5:6, :][None]; wk1 = wp[6:7, :][None]

        # Shelf rows are [nd:], depot rows are [:nd].
        row_id = lax.broadcasted_iota(jnp.int32, (1, N, 1), 1)
        is_shelf = row_id >= nd                                            # [1, N, 1]

        # supply == supply_w_depot[:, nd:, :]; depot rows masked so the same
        # resident tile feeds num_stored, num_storage_loc and the edge embedding
        # (supply data crosses HBM exactly once).
        stored = jnp.where(jnp.logical_and(is_shelf, swd > 0.0), 1.0, 0.0)  # [TB,N,K]
        num_stored = jnp.sum(stored, axis=2, keepdims=True)                 # [TB,N,1] lane reduce
        num_loc_row = jnp.sum(stored, axis=1, keepdims=True)                # [TB,1,K] sublane reduce
        loc_col = jnp.swapaxes(num_loc_row, 1, 2)                           # [TB,K,1] XLU transpose

        # ---- node embedding: one dense [TB, N, D] store ----------------------
        wx = jnp.where(is_shelf, ws0, wd0)                                  # [1, N, D]
        wy = jnp.where(is_shelf, ws1, wd1)                                  # [1, N, D]
        node_ref[...] = x * wx + y * wy + num_stored * ws2                  # depot rows: +0

        # ---- sku embedding ----------------------------------------------------
        sku_ref[...] = dem_col * wk0 + loc_col * wk1                        # [TB, K, D]

        # ---- edge embedding ---------------------------------------------------
        if scale_supply_by_demand:
            inv_dem = 1.0 / aux                          # exact, only TB*K divides
            ratio = jnp.minimum(swd * inv_dem, 1.0)
            edge_ref[...] = jnp.where(aux == 0.0, 0.0, ratio)   # mask AFTER min
        else:
            edge_ref[...] = swd * aux                    # aux = 1/capacity row (host)

    return kernel


# --------------------------------------------------------------------------- #
# Tiling / hardware hints
# --------------------------------------------------------------------------- #
def _round_up(v, m):
    return ((v + m - 1) // m) * m


def _vmem_tile_bytes(sub, lane, itemsize=4):
    # VMEM tiles pad the second-minor dim to 8 and the minor dim to 128 lanes.
    return _round_up(max(int(sub), 1), 8) * _round_up(max(int(lane), 1), 128) * itemsize


def _device_hints():
    """(physical VMEM bytes, TensorCore count); conservative fallbacks."""
    vmem_cap = 64 * 1024 * 1024     # v7x physical per-TC (v5e/v6e have 128 MiB)
    cores = 2                       # assume possibly multi-TC; only affects small-B balance
    try:
        info = pltpu.get_tpu_info()
        for name in ("vmem_capacity_bytes", "vmem_bytes", "vmem_size_bytes"):
            v = getattr(info, name, None)
            if v:
                vmem_cap = int(v)
                break
        for name in ("num_cores", "tensorcore_count", "num_tensorcores", "core_count"):
            c = getattr(info, name, None)
            if c:
                cores = int(c)
                break
    except Exception:
        pass
    return vmem_cap, cores


def _choose_tiling(B, N, K, D, block_batches=None):
    vmem_cap, cores = _device_hints()

    # Per-batch VMEM footprint of the pipelined tiles (with lane/sublane padding).
    per_batch_vmem = (
        _vmem_tile_bytes(N, 2)        # coordinates
        + _vmem_tile_bytes(1, K)      # demand / inv-cap row
        + _vmem_tile_bytes(K, 1)      # demand / capacity column
        + _vmem_tile_bytes(N, K)      # supply_w_depot
        + _vmem_tile_bytes(N, D)      # node_emb
        + _vmem_tile_bytes(K, D)      # sku_emb
        + _vmem_tile_bytes(N, K)      # edge_emb
    )
    per_batch_interm = 2 * _vmem_tile_bytes(N, K)   # stored / ratio temporaries

    if block_batches is None:
        budget = max(8 << 20, vmem_cap // 3)        # headroom under physical VMEM
        tb_vmem = max(1, budget // (2 * per_batch_vmem + per_batch_interm))
        per_batch_io = 4 * (2 * N + 2 * K + 2 * N * K + N * D + K * D)
        tb_io = max(1, (16 << 20) // per_batch_io)  # ~16 MiB raw HBM I/O per step
        tb = int(min(tb_vmem, tb_io, B))
        if cores > 1 and B >= cores:
            tb = min(tb, -(-B // cores))            # >= 1 step per TensorCore
        tb = max(1, tb)
    else:
        tb = int(block_batches)

    steps = -(-B // tb)
    if cores > 1:
        steps = _round_up(steps, cores)             # balanced grid across TCs
    b_padded = steps * tb

    vmem_limit = 2 * tb * per_batch_vmem + tb * per_batch_interm + (6 << 20)
    vmem_limit = int(min(max(vmem_limit, 16 << 20), int(0.85 * vmem_cap)))
    return tb, b_padded, vmem_limit


# --------------------------------------------------------------------------- #
# Host wrapper
# --------------------------------------------------------------------------- #
def multi_agent_init_embedding(coordinates, supply_w_depot, demand, capacity,
                               w_depot, w_shelf, w_sku, *, num_depots,
                               scale_supply_by_demand=True, block_batches=None):
    B, N, _ = coordinates.shape
    K = supply_w_depot.shape[2]
    S = N - num_depots
    D = w_depot.shape[1]
    f32 = jnp.float32

    coords = coordinates.astype(f32)                       # [B, N, 2]
    swd = supply_w_depot.astype(f32)                       # [B, N, K]
    dem = demand.astype(f32)                               # [B, K]
    cap = capacity.astype(f32)                             # [B]

    # Exact host-side divide; capacity never enters the kernel.
    dem_col = (dem / cap[:, None])[..., None]              # [B, K, 1]
    if scale_supply_by_demand:
        row_aux = dem[:, None, :]                          # [B, 1, K] raw demand row
    else:
        row_aux = jnp.broadcast_to((1.0 / cap)[:, None, None], (B, 1, K)).astype(f32)

    # Fold constant scalings into one packed, grid-invariant [8, D] weight block.
    wp = jnp.zeros((8, D), f32)
    wp = wp.at[0:2].set(w_depot.astype(f32))
    wp = wp.at[2:5].set(w_shelf.astype(f32) * jnp.array([1.0, 1.0, 1.0 / K], f32)[:, None])
    wp = wp.at[5:7].set(w_sku.astype(f32) * jnp.array([1.0, 1.0 / S], f32)[:, None])

    tb, b_padded, vmem_limit = _choose_tiling(B, N, K, D, block_batches)
    if b_padded != B:
        pad = b_padded - B
        coords = jnp.pad(coords, ((0, pad), (0, 0), (0, 0)))
        swd = jnp.pad(swd, ((0, pad), (0, 0), (0, 0)))
        dem_col = jnp.pad(dem_col, ((0, pad), (0, 0), (0, 0)))
        row_aux = jnp.pad(row_aux, ((0, pad), (0, 0), (0, 0)))
    grid = (b_padded // tb,)

    kernel = _make_kernel(num_depots, scale_supply_by_demand)

    node_emb, sku_emb, edge_emb = pl.pallas_call(
        kernel,
        grid=grid,
        in_specs=[
            pl.BlockSpec((tb, N, 2), lambda b: (b, 0, 0)),   # coordinates
            pl.BlockSpec((tb, 1, K), lambda b: (b, 0, 0)),   # demand row / inv-cap row
            pl.BlockSpec((tb, K, 1), lambda b: (b, 0, 0)),   # demand / capacity column
            pl.BlockSpec((tb, N, K), lambda b: (b, 0, 0)),   # supply_w_depot
            pl.BlockSpec((8, D), lambda b: (0, 0)),          # packed weights (grid-invariant)
        ],
        out_specs=[
            pl.BlockSpec((tb, N, D), lambda b: (b, 0, 0)),   # node_emb
            pl.BlockSpec((tb, K, D), lambda b: (b, 0, 0)),   # sku_emb
            pl.BlockSpec((tb, N, K), lambda b: (b, 0, 0)),   # edge_emb
        ],
        out_shape=[
            jax.ShapeDtypeStruct((b_padded, N, D), f32),
            jax.ShapeDtypeStruct((b_padded, K, D), f32),
            jax.ShapeDtypeStruct((b_padded, N, K), f32),
        ],
        compiler_params=pltpu.CompilerParams(
            dimension_semantics=("parallel",),
            vmem_limit_bytes=vmem_limit),
    )(coords, row_aux, dem_col, swd, wp)

    if b_padded != B:
        node_emb, sku_emb, edge_emb = node_emb[:B], sku_emb[:B], edge_emb[:B]
    return node_emb, sku_emb, edge_emb


# --------------------------------------------------------------------------- #
# Pure-JAX reference (mirror of the PyTorch forward, for verification)
# --------------------------------------------------------------------------- #
def _reference(coordinates, supply, supply_w_depot, demand, capacity,
               w_depot, w_shelf, w_sku, num_depots, scale_supply_by_demand):
    S, K = supply.shape[1], supply.shape[2]
    depot_emb = coordinates[:, :num_depots] @ w_depot
    num_stored = jnp.sum(supply > 0, axis=-1).astype(jnp.float32)        # [B, S]
    shelf_feats = jnp.concatenate(
        [coordinates[:, num_depots:], (num_stored / K)[..., None]], axis=-1)
    shelf_emb = shelf_feats @ w_shelf
    num_loc = jnp.sum(supply > 0, axis=1).astype(jnp.float32)            # [B, K]
    sku_feats = jnp.stack([demand / capacity[:, None], num_loc / S], axis=-1)
    sku_emb = sku_feats @ w_sku
    if scale_supply_by_demand:
        dem = demand[:, None, :]
        edge = jnp.where(dem == 0, jnp.zeros_like(supply_w_depot),
                         jnp.minimum(supply_w_depot / dem, 1.0))
    else:
        edge = supply_w_depot / capacity[:, None, None]
    node_emb = jnp.concatenate([depot_emb, shelf_emb], axis=1)
    return node_emb, sku_emb, edge


if __name__ == "__main__":
    num_depots, num_shelves, num_skus, D = 2, 14, 128, 128   # lane-dense K and D
    N = num_depots + num_shelves
    B_full = 4

    key = jax.random.PRNGKey(0)
    k1, k2, k3, k4, k5, k6, k7 = jax.random.split(key, 7)

    coordinates = jax.random.uniform(k1, (B_full, N, 2), dtype=jnp.float32)
    supply = jnp.round(jax.random.uniform(k2, (B_full, num_shelves, num_skus)) * 5.0)
    supply = supply * (jax.random.uniform(k3, supply.shape) > 0.3).astype(jnp.float32)
    demand = jnp.round(jax.random.uniform(k4, (B_full, num_skus)) * 4.0)
    demand = demand.at[0, 0].set(0.0)                   # guarantee a zero-demand SKU
    capacity = jnp.full((B_full,), 10.0, dtype=jnp.float32)
    supply_w_depot = jnp.concatenate(
        [jnp.zeros((B_full, num_depots, num_skus), jnp.float32), supply], axis=1)

    # deterministic "Linear" weights, stored as [in_features, out_features]
    w_depot = 0.1 * jax.random.normal(k5, (2, D), dtype=jnp.float32)
    w_shelf = 0.1 * jax.random.normal(k6, (3, D), dtype=jnp.float32)
    w_sku = 0.1 * jax.random.normal(k7, (2, D), dtype=jnp.float32)

    # (B=3, True) exercises the non-divisor batch-padding path.
    for B, scale_by_demand in ((4, True), (4, False), (3, True)):
        node_emb, sku_emb, edge_emb = multi_agent_init_embedding(
            coordinates[:B], supply_w_depot[:B], demand[:B], capacity[:B],
            w_depot, w_shelf, w_sku,
            num_depots=num_depots, scale_supply_by_demand=scale_by_demand)
        jax.block_until_ready((node_emb, sku_emb, edge_emb))

        ref_node, ref_sku, ref_edge = _reference(
            coordinates[:B], supply[:B], supply_w_depot[:B], demand[:B], capacity[:B],
            w_depot, w_shelf, w_sku, num_depots, scale_by_demand)

        np.testing.assert_allclose(np.asarray(node_emb), np.asarray(ref_node),
                                   rtol=1e-5, atol=1e-5)
        np.testing.assert_allclose(np.asarray(sku_emb), np.asarray(ref_sku),
                                   rtol=1e-5, atol=1e-5)
        np.testing.assert_allclose(np.asarray(edge_emb), np.asarray(ref_edge),
                                   rtol=1e-5, atol=1e-5)

    print("KERNEL_OK")
</pallas_src>

<mosaic_0001>
module attributes {stable_mosaic.version = 11 : i64} {
  func.func @kernel(%arg0: i32, %arg1: memref<2x16x2xf32, #tpu.memory_space<vmem>>, %arg2: memref<2x1x128xf32, #tpu.memory_space<vmem>>, %arg3: memref<2x128x1xf32, #tpu.memory_space<vmem>>, %arg4: memref<2x16x128xf32, #tpu.memory_space<vmem>>, %arg5: memref<8x128xf32, #tpu.memory_space<vmem>>, %arg6: memref<2x16x128xf32, #tpu.memory_space<vmem>>, %arg7: memref<2x128x128xf32, #tpu.memory_space<vmem>>, %arg8: memref<2x16x128xf32, #tpu.memory_space<vmem>>) attributes {dimension_semantics = [#tpu.dimension_semantics<parallel>], iteration_bounds = array<i64: 2>, scalar_prefetch = 0 : i64, scratch_operands = 0 : i64, tpu.core_type = #tpu.core_type<tc>, window_params = [{transform_indices = @transform_0, window_bounds = array<i64: 2, 16, 2>}, {transform_indices = @transform_1, window_bounds = array<i64: 2, 1, 128>}, {transform_indices = @transform_2, window_bounds = array<i64: 2, 128, 1>}, {transform_indices = @transform_3, window_bounds = array<i64: 2, 16, 128>}, {pipeline_mode = #tpu.pipeline_mode<synchronous>, transform_indices = @transform_4, window_bounds = array<i64: 8, 128>}, {transform_indices = @transform_5, window_bounds = array<i64: 2, 16, 128>}, {transform_indices = @transform_6, window_bounds = array<i64: 2, 128, 128>}, {transform_indices = @transform_7, window_bounds = array<i64: 2, 16, 128>}]} {
    %c0 = arith.constant 0 : index
    %c0_0 = arith.constant 0 : index
    %c0_1 = arith.constant 0 : index
    %0 = vector.load %arg4[%c0, %c0_0, %c0_1] : memref<2x16x128xf32, #tpu.memory_space<vmem>>, vector<2x16x128xf32>
    %c0_2 = arith.constant 0 : index
    %c0_3 = arith.constant 0 : index
    %c0_4 = arith.constant 0 : index
    %1 = vector.load %arg1[%c0_2, %c0_3, %c0_4] : memref<2x16x2xf32, #tpu.memory_space<vmem>>, vector<2x16x2xf32>
    %2 = vector.extract_strided_slice %1 {offsets = [0, 0, 0], sizes = [2, 16, 1], strides = [1, 1, 1]} : vector<2x16x2xf32> to vector<2x16x1xf32>
    %3 = vector.extract_strided_slice %1 {offsets = [0, 0, 1], sizes = [2, 16, 1], strides = [1, 1, 1]} : vector<2x16x2xf32> to vector<2x16x1xf32>
    %c0_5 = arith.constant 0 : index
    %c0_6 = arith.constant 0 : index
    %c0_7 = arith.constant 0 : index
    %4 = vector.load %arg2[%c0_5, %c0_6, %c0_7] : memref<2x1x128xf32, #tpu.memory_space<vmem>>, vector<2x1x128xf32>
    %c0_8 = arith.constant 0 : index
    %c0_9 = arith.constant 0 : index
    %c0_10 = arith.constant 0 : index
    %5 = vector.load %arg3[%c0_8, %c0_9, %c0_10] : memref<2x128x1xf32, #tpu.memory_space<vmem>>, vector<2x128x1xf32>
    %c0_11 = arith.constant 0 : index
    %c0_12 = arith.constant 0 : index
    %6 = vector.load %arg5[%c0_11, %c0_12] : memref<8x128xf32, #tpu.memory_space<vmem>>, vector<8x128xf32>
    %7 = vector.extract_strided_slice %6 {offsets = [0, 0], sizes = [1, 128], strides = [1, 1]} : vector<8x128xf32> to vector<1x128xf32>
    %8 = vector.shape_cast %7 : vector<1x128xf32> to vector<1x1x128xf32>
    %9 = vector.extract_strided_slice %6 {offsets = [1, 0], sizes = [1, 128], strides = [1, 1]} : vector<8x128xf32> to vector<1x128xf32>
    %10 = vector.shape_cast %9 : vector<1x128xf32> to vector<1x1x128xf32>
    %11 = vector.extract_strided_slice %6 {offsets = [2, 0], sizes = [1, 128], strides = [1, 1]} : vector<8x128xf32> to vector<1x128xf32>
    %12 = vector.shape_cast %11 : vector<1x128xf32> to vector<1x1x128xf32>
    %13 = vector.extract_strided_slice %6 {offsets = [3, 0], sizes = [1, 128], strides = [1, 1]} : vector<8x128xf32> to vector<1x128xf32>
    %14 = vector.shape_cast %13 : vector<1x128xf32> to vector<1x1x128xf32>
    %15 = vector.extract_strided_slice %6 {offsets = [4, 0], sizes = [1, 128], strides = [1, 1]} : vector<8x128xf32> to vector<1x128xf32>
    %16 = vector.shape_cast %15 : vector<1x128xf32> to vector<1x1x128xf32>
    %17 = vector.extract_strided_slice %6 {offsets = [5, 0], sizes = [1, 128], strides = [1, 1]} : vector<8x128xf32> to vector<1x128xf32>
    %18 = vector.shape_cast %17 : vector<1x128xf32> to vector<1x1x128xf32>
    %19 = vector.extract_strided_slice %6 {offsets = [6, 0], sizes = [1, 128], strides = [1, 1]} : vector<8x128xf32> to vector<1x128xf32>
    %20 = vector.shape_cast %19 : vector<1x128xf32> to vector<1x1x128xf32>
    %21 = tpu.iota {dimensions = array<i32: 1>} : vector<1x16x1xi32>
    %c2_i32 = arith.constant 2 : i32
    %22 = vector.broadcast %c2_i32 : i32 to vector<1x16x1xi32>
    %23 = arith.cmpi sge, %21, %22 : vector<1x16x1xi32>
    %cst = arith.constant 0.000000e+00 : f32
    %24 = vector.broadcast %cst : f32 to vector<2x16x128xf32>
    %25 = arith.cmpf ogt, %0, %24 : vector<2x16x128xf32>
    %26 = vector.broadcast %23 : vector<1x16x1xi1> to vector<2x16x128xi1>
    %27 = arith.andi %26, %25 : vector<2x16x128xi1>
    %cst_13 = arith.constant 1.000000e+00 : f32
    %cst_14 = arith.constant 0.000000e+00 : f32
    %28 = vector.broadcast %cst_13 : f32 to vector<2x16x128xf32>
    %29 = vector.broadcast %cst_14 : f32 to vector<2x16x128xf32>
    %30 = arith.select %27, %28, %29 : vector<2x16x128xi1>, vector<2x16x128xf32>
    %cst_15 = arith.constant dense<0.000000e+00> : vector<2x16xf32>
    %31 = vector.multi_reduction <add>, %30, %cst_15 [2] : vector<2x16x128xf32> to vector<2x16xf32>
    %32 = vector.shape_cast %31 : vector<2x16xf32> to vector<2x16x1xf32>
    %cst_16 = arith.constant dense<0.000000e+00> : vector<2x128xf32>
    %33 = vector.multi_reduction <add>, %30, %cst_16 [1] : vector<2x16x128xf32> to vector<2x128xf32>
    %34 = vector.shape_cast %33 : vector<2x128xf32> to vector<2x1x128xf32>
    %35 = tpu.transpose %34, [0, 2, 1] : vector<2x1x128xf32> -> vector<2x128x1xf32>
    %36 = vector.shape_cast %23 : vector<1x16x1xi1> to vector<1x16x1xi1>
    %37 = vector.broadcast %36 : vector<1x16x1xi1> to vector<1x16x128xi1>
    %38 = vector.shape_cast %12 : vector<1x1x128xf32> to vector<1x1x128xf32>
    %39 = vector.broadcast %38 : vector<1x1x128xf32> to vector<1x16x128xf32>
    %40 = vector.shape_cast %8 : vector<1x1x128xf32> to vector<1x1x128xf32>
    %41 = vector.broadcast %40 : vector<1x1x128xf32> to vector<1x16x128xf32>
    %42 = arith.select %37, %39, %41 : vector<1x16x128xi1>, vector<1x16x128xf32>
    %43 = vector.shape_cast %23 : vector<1x16x1xi1> to vector<1x16x1xi1>
    %44 = vector.broadcast %43 : vector<1x16x1xi1> to vector<1x16x128xi1>
    %45 = vector.shape_cast %14 : vector<1x1x128xf32> to vector<1x1x128xf32>
    %46 = vector.broadcast %45 : vector<1x1x128xf32> to vector<1x16x128xf32>
    %47 = vector.shape_cast %10 : vector<1x1x128xf32> to vector<1x1x128xf32>
    %48 = vector.broadcast %47 : vector<1x1x128xf32> to vector<1x16x128xf32>
    %49 = arith.select %44, %46, %48 : vector<1x16x128xi1>, vector<1x16x128xf32>
    %50 = vector.broadcast %2 : vector<2x16x1xf32> to vector<2x16x128xf32>
    %51 = vector.broadcast %42 : vector<1x16x128xf32> to vector<2x16x128xf32>
    %52 = arith.mulf %50, %51 : vector<2x16x128xf32>
    %53 = vector.broadcast %3 : vector<2x16x1xf32> to vector<2x16x128xf32>
    %54 = vector.broadcast %49 : vector<1x16x128xf32> to vector<2x16x128xf32>
    %55 = arith.mulf %53, %54 : vector<2x16x128xf32>
    %56 = arith.addf %52, %55 : vector<2x16x128xf32>
    %57 = vector.broadcast %32 : vector<2x16x1xf32> to vector<2x16x128xf32>
    %58 = vector.broadcast %16 : vector<1x1x128xf32> to vector<2x16x128xf32>
    %59 = arith.mulf %57, %58 : vector<2x16x128xf32>
    %60 = arith.addf %56, %59 : vector<2x16x128xf32>
    %c0_17 = arith.constant 0 : index
    %c0_18 = arith.constant 0 : index
    %c0_19 = arith.constant 0 : index
    %61 = vector.load %arg6[%c0_17, %c0_18, %c0_19] : memref<2x16x128xf32, #tpu.memory_space<vmem>>, vector<2x16x128xf32>
    tpu.vector_store %arg6[%c0_17, %c0_18, %c0_19], %60 {strides = array<i32>} : memref<2x16x128xf32, #tpu.memory_space<vmem>>, vector<2x16x128xf32>,
    %62 = vector.broadcast %5 : vector<2x128x1xf32> to vector<2x128x128xf32>
    %63 = vector.broadcast %18 : vector<1x1x128xf32> to vector<2x128x128xf32>
    %64 = arith.mulf %62, %63 : vector<2x128x128xf32>
    %65 = vector.broadcast %35 : vector<2x128x1xf32> to vector<2x128x128xf32>
    %66 = vector.broadcast %20 : vector<1x1x128xf32> to vector<2x128x128xf32>
    %67 = arith.mulf %65, %66 : vector<2x128x128xf32>
    %68 = arith.addf %64, %67 : vector<2x128x128xf32>
    %c0_20 = arith.constant 0 : index
    %c0_21 = arith.constant 0 : index
    %c0_22 = arith.constant 0 : index
    %69 = vector.load %arg7[%c0_20, %c0_21, %c0_22] : memref<2x128x128xf32, #tpu.memory_space<vmem>>, vector<2x128x128xf32>
    tpu.vector_store %arg7[%c0_20, %c0_21, %c0_22], %68 {strides = array<i32>} : memref<2x128x128xf32, #tpu.memory_space<vmem>>, vector<2x128x128xf32>,
    %cst_23 = arith.constant 1.000000e+00 : f32
    %70 = vector.broadcast %cst_23 : f32 to vector<2x1x128xf32>
    %71 = arith.divf %70, %4 : vector<2x1x128xf32>
    %72 = vector.broadcast %71 : vector<2x1x128xf32> to vector<2x16x128xf32>
    %73 = arith.mulf %0, %72 : vector<2x16x128xf32>
    %cst_24 = arith.constant 1.000000e+00 : f32
    %74 = vector.broadcast %cst_24 : f32 to vector<2x16x128xf32>
    %75 = arith.minimumf %73, %74 : vector<2x16x128xf32>
    %cst_25 = arith.constant 0.000000e+00 : f32
    %76 = vector.broadcast %cst_25 : f32 to vector<2x1x128xf32>
    %77 = arith.cmpf oeq, %4, %76 : vector<2x1x128xf32>
    %cst_26 = arith.constant 0.000000e+00 : f32
    %78 = vector.shape_cast %77 : vector<2x1x128xi1> to vector<2x1x128xi1>
    %79 = vector.broadcast %78 : vector<2x1x128xi1> to vector<2x16x128xi1>
    %80 = vector.broadcast %cst_26 : f32 to vector<2x16x128xf32>
    %81 = arith.select %79, %80, %75 : vector<2x16x128xi1>, vector<2x16x128xf32>
    %c0_27 = arith.constant 0 : index
    %c0_28 = arith.constant 0 : index
    %c0_29 = arith.constant 0 : index
    %82 = vector.load %arg8[%c0_27, %c0_28, %c0_29] : memref<2x16x128xf32, #tpu.memory_space<vmem>>, vector<2x16x128xf32>
    tpu.vector_store %arg8[%c0_27, %c0_28, %c0_29], %81 {strides = array<i32>} : memref<2x16x128xf32, #tpu.memory_space<vmem>>, vector<2x16x128xf32>,
    return
  }
  func.func @transform_0(%arg0: i32) -> (i32, i32, i32) {
    %c0_i32 = arith.constant 0 : i32
    %c0_i32_0 = arith.constant 0 : i32
    %c0_i32_1 = arith.constant 0 : i32
    return %arg0, %c0_i32, %c0_i32_0 : i32, i32, i32
  }
  func.func @transform_1(%arg0: i32) -> (i32, i32, i32) {
    %c0_i32 = arith.constant 0 : i32
    %c0_i32_0 = arith.constant 0 : i32
    %c0_i32_1 = arith.constant 0 : i32
    return %arg0, %c0_i32, %c0_i32_0 : i32, i32, i32
  }
  func.func @transform_2(%arg0: i32) -> (i32, i32, i32) {
    %c0_i32 = arith.constant 0 : i32
    %c0_i32_0 = arith.constant 0 : i32
    %c0_i32_1 = arith.constant 0 : i32
    return %arg0, %c0_i32, %c0_i32_0 : i32, i32, i32
  }
  func.func @transform_3(%arg0: i32) -> (i32, i32, i32) {
    %c0_i32 = arith.constant 0 : i32
    %c0_i32_0 = arith.constant 0 : i32
    %c0_i32_1 = arith.constant 0 : i32
    return %arg0, %c0_i32, %c0_i32_0 : i32, i32, i32
  }
  func.func @transform_4(%arg0: i32) -> (i32, i32) {
    %c0_i32 = arith.constant 0 : i32
    %c0_i32_0 = arith.constant 0 : i32
    %c0_i32_1 = arith.constant 0 : i32
    return %c0_i32, %c0_i32_0 : i32, i32
  }
  func.func @transform_5(%arg0: i32) -> (i32, i32, i32) {
    %c0_i32 = arith.constant 0 : i32
    %c0_i32_0 = arith.constant 0 : i32
    %c0_i32_1 = arith.constant 0 : i32
    return %arg0, %c0_i32, %c0_i32_0 : i32, i32, i32
  }
  func.func @transform_6(%arg0: i32) -> (i32, i32, i32) {
    %c0_i32 = arith.constant 0 : i32
    %c0_i32_0 = arith.constant 0 : i32
    %c0_i32_1 = arith.constant 0 : i32
    return %arg0, %c0_i32, %c0_i32_0 : i32, i32, i32
  }
  func.func @transform_7(%arg0: i32) -> (i32, i32, i32) {
    %c0_i32 = arith.constant 0 : i32
    %c0_i32_0 = arith.constant 0 : i32
    %c0_i32_1 = arith.constant 0 : i32
    return %arg0, %c0_i32, %c0_i32_0 : i32, i32, i32
  }
}

</mosaic_0001>

<bundles_post_ra>
// kernel: tpu_custom_call.1
= control target key start
LH: loop header
LB: loop body
LE: loop exit
PB: predicated region body
PF: predicated region fallthrough
CT: control target
= control target key end

     0   :  { %13 = vsyncpa [#allocation3], 0  ;;  %s2132_s0 = inlined_call_operand.vmem [shape: f32[4,16,2], index: 0, kind: input, shape index: {}]   ;;  %s2133_s1 = inlined_call_operand.vmem [shape: f32[4,1,128], index: 1, kind: input, shape index: {}]   ;;  %s2134_s2 = inlined_call_operand.vmem [shape: f32[4,128,1], index: 2, kind: input, shape index: {}]   ;;  %s2135_s3 = inlined_call_operand.vmem [shape: f32[4,16,128], index: 3, kind: input, shape index: {}]   ;;  %s2136_s4 = inlined_call_operand.vmem [shape: f32[8,128], index: 4, kind: input, shape index: {}]   ;;  %s2137_s5 = inlined_call_operand.hbm [shape: f32[4,16,128], index: 5, kind: output, shape index: {0}]   ;;  %s2138_s6 = inlined_call_operand.hbm [shape: f32[4,128,128], index: 6, kind: output, shape index: {1}]   ;;  %s2139_s7 = inlined_call_operand.hbm [shape: f32[4,16,128], index: 7, kind: output, shape index: {2}]  }
   0x1   :  { %15 = vsyncpa [#allocation3 + $0x1], 0 }
   0x2   :  { %16 = vsyncpa [#allocation5], 0 }
   0x3   :  { %18 = vsyncpa [#allocation5 + $0x1], 0  ;;  %s1592_s24 = smov 0   ;;  %s1594_s25 = smov 0  }
   0x4   :  { %s1596_s26 = smov 0   ;;  %s1598_s27 = smov 0  }
   0x5 LB: > { %s1613_s28 = sadd.s32 4294967295, %s1542_s27   ;;  %s2140_s29 = sadd.s32 4294967294, %s1542_s27   ;;  %s1542_s27 = sphi %s1598_s27, %s2155_s27   ;;  %s1538_s26 = sphi %s1596_s26, %s2154_s26   ;;  %s1534_s25 = sphi %s1594_s25, %s2153_s25   ;;  %s1530_s24 = sphi %s1592_s24, %s2152_s24  }
   0x6   : > { %s1617_s30 = sadd.s32 1, %s1542_s27   ;;  %s156_s8 = sadd.s32 1, %s1538_s26 }
   0x7   : > { %s153_s9 = ssub.s32 %s1542_s27, %s1617_s30  ;;  %p166_p0 = scmp.ne.s32.totalorder %s1538_s26, %s1534_s25 }
   0x8   : > { %p154_p1 = scmp.eq.s32.totalorder %s153_s9, 0  ;;  %p167_p2 = scmp.eq.s32.totalorder %s1613_s28, 1 }
   0x9   : > { %p172_p3 = scmp.ne.s32.totalorder %s1534_s25, %s1530_s24  ;;  %p173_p4 = scmp.eq.s32.totalorder %s2140_s29, 1 }
   0xa   : > { %s1630_s10 = scalar_select %p154_p1, %s1538_s26, %s156_s8  }
   0xb   : > { %p1632_p5 = por %p167_p2, %p166_p0  ;;  %p1636_p6 = por %p173_p4, %p172_p3 }
   0xc   : > { %p1326_p7 = scmp.ge.s32.totalorder %s1542_s27, 1  ;;  %p284_p8 = scmp.lt.s32.totalorder %s1542_s27, 3 }
   0xe   : > { %p285_p9 = pnand %p1326_p7, %p284_p8 }
   0xf   : > { %s1330_s13 = sshll.u32 (!%p285_p9), %s1613_s28, 1  ;;  %s1678_s8 = sand.u32 (!%p285_p9), 1, %s1534_s25  }
  0x10   : > { %288 = sbr.rel (%p285_p9) target bundleno = 486 (0x1e6), region = 40  ;;  %p344_p10 = scmp.lt.s32.totalorder (!%p285_p9), %s1330_s13, 3 }
  0x11   : > { %s1327_s9 = sshll.u32 (!%p285_p9), %s1678_s8, 5  ;;  %s2141_s22 = sshll.u32 (!%p285_p9), %s1613_s28, 9 }
  0x12   : > { %s1683_s15 = scalar_lea.vmem (!%p285_p9), [#allocation6], %s1327_s9  ;;  %s1109_s16 = scalar_lea.sflag (!%p285_p9), [#allocation3], %s1678_s8 }
  0x15   : > { %v415_v0 = vlaneseq  ;;  %s2157_s13 = smov (!%p344_p10, %s1330_s13), 3  ;;  %v1544_v8 = vmov 0.0   ;;  %v1545_v20 = vmov 0   ;;  %v1546_v49 = vmov 1  }
  0x16   : > { %s1354_s14 = sshll.u32 %s2157_s13, 4  ;;  %s353_s17 = scalar_lea.vmem %s2133_s1, %s2157_s13 }
  0x17   : > { %v1643_v1 = vshrl.u32 %v415_v0, 7  ;;  %s367_s20 = scalar_lea.vmem %s2135_s3, %s1354_s14  ;;  %v380_v2 = vld [vmem:[%s353_s17] sm:$0x1]  ;;  %v381_v3 = vld [vmem:[%s353_s17 + $0x1] sm:$0x1]  ;;  %s348_s23 = scalar_lea.vmem %s2132_s0, %s1354_s14 }
  0x18   : > { %v374_v4 = vld [vmem:[%s367_s20 + $0x10] sm:$0xff]  ;;  %v375_v5 = vld [vmem:[%s367_s20 + $0x18] sm:$0xff]  ;;  %1422 = vrcp.f32 %v380_v2  ;;  %v372_v6 = vld [vmem:[%s367_s20] sm:$0xff]  ;;  %vm1086_vm7 = vcmp.eq.f32.partialorder %v380_v2, 0.0  ;;  %vm1087_vm8 = vcmp.eq.f32.partialorder %v381_v3, 0.0  ;;  %s1355_s14 = sshll.u32 %s2157_s13, 7 }
  0x19   : > { %vm418_vm0 = vcmp.ge.s32.totalorder %v1643_v1, 2  ;;  %vm422_vm1 = vcmp.gt.f32.partialorder %v374_v4, 0.0  ;;  %vm423_vm2 = vcmp.gt.f32.partialorder %v375_v5, 0.0  ;;  %1424 = vrcp.f32 %v381_v3  ;;  %v373_v7 = vld [vmem:[%s367_s20 + $0x8] sm:$0xff]  ;;  %v378_v51 = vld [vmem:[%s348_s23 + $0x10] sm:$0xff]  ;;  %v379_v52 = vld [vmem:[%s348_s23 + $0x18] sm:$0xff]  ;;  %s1693_s18 = scalar_lea.vmem %s2134_s2, %s1355_s14  ;;  %s1829_s14 = scalar_lea.hbm %s2137_s5, %s2141_s22 }
  0x1a   : > { %vm420_vm3 = vcmp.gt.f32.partialorder %v372_v6, 0.0  ;;  %vm430_vm4 = vmand %vm418_vm0, %vm422_vm1  ;;  %v435_v9 = vsel %vm423_vm2, 1.0, %v1544_v8  ;;  %vm421_vm5 = vcmp.gt.f32.partialorder %v373_v7, 0.0  ;;  %v1088_v21 = vsel %vm1086_vm7, 1, %v1545_v20  ;;  %v377_v50 = vld [vmem:[%s348_s23 + $0x8] sm:$0xff]  ;;  %v376_v53 = vld [vmem:[%s348_s23] sm:$0xff] }
  0x1b   : > { %v434_v10 = vsel %vm430_vm4, 1.0, %v1544_v8  ;;  %vm428_vm6 = vmand %vm418_vm0, %vm420_vm3  ;;  %v433_v11 = vsel %vm421_vm5, 1.0, %v1544_v8  ;;  %v1664_v22 = vsub.s32 0, %v1643_v1  ;;  %v1089_v24 = vsel %vm1087_vm8, 1, %v1545_v20  ;;  %v382_v54 = vld [vmem:[%s1693_s18] sm:$0xff]  ;;  %v383_v56 = vld [vmem:[%s1693_s18 + $0x8] sm:$0xff] }
  0x1c   : > { %v451_v12 = vadd.f32 %v435_v9, %v434_v10  ;;  %v432_v13 = vsel %vm428_vm6, 1.0, %v1544_v8  ;;  %v384_v57 = vld [vmem:[%s1693_s18 + $0x10] sm:$0xff]  ;;  %v386_v58 = vld [vmem:[%s1693_s18 + $0x20] sm:$0xff]  ;;  %v385_v61 = vld [vmem:[%s1693_s18 + $0x18] sm:$0xff]  ;;  %s328_s20 = scalar_lea.vmem [#allocation2], %s1327_s9 }
  0x1d   : > { %v444_v14 = vadd.f32 %v433_v11, %v432_v13  ;;  %v1093_v28 = vrot.slane %v1088_v21, %v1664_v22  ;;  %v1097_v32 = vrot.slane %v1089_v24, %v1664_v22  ;;  %v388_v62 = vld [vmem:[%s1693_s18 + $0x30] sm:$0xff]  ;;  %v387_v63 = vld [vmem:[%s1693_s18 + $0x28] sm:$0xff]  ;;  %v390_v3 = vld [vmem:[%s1693_s18 + $0x40] sm:$0xff]  ;;  %s1133_s21 = sshll.u32 %s328_s20, 4  ;;  %s1815_s21 = int_to_ptr.vmem [resolvable:$true] %s1133_s21 }
  0x1e   : > { %v452_v15 = vrot.slane %v451_v12, 4  ;;  %v391_v8 = vld [vmem:[%s1693_s18 + $0x48] sm:$0xff]  ;;  %v402_v24 = vld [vmem:[%s1693_s18 + $0xa0] sm:$0xff]  ;;  %s1426_s17 = scalar_lea.vmem %s1815_s21, 512 }
  0x1f   : > { %v445_v16 = vrot.slane %v444_v14, 4  ;;  %vm1098_vm9 = vcmp.eq.s32.totalorder %v1093_v28, 1  ;;  %vm1099_vm10 = vcmp.eq.s32.totalorder %v1097_v32, 1  ;;  %p1427_p11 = scmp.ne.s32.totalorder %s1815_s21, %s1426_s17 }
  0x20   : > { %v453_v17 = vadd.f32 %v452_v15, %v451_v12  ;;  %v398_v15 = vld [vmem:[%s1693_s18 + $0x80] sm:$0xff] }
  0x21   : > { %v446_v18 = vadd.f32 %v445_v16, %v444_v14  ;;  %v395_v14 = vld [vmem:[%s1693_s18 + $0x68] sm:$0xff]  ;;  %p1428_p12 = pnand %p1427_p11, %p1632_p5 }
  0x22   : > { %v454_v19 = vrot.slane %v453_v17, 2 }
  0x23   : > { %v447_v23 = vrot.slane %v446_v18, 2  ;;  %p1429_p13 = pneg %p1428_p12 }
  0x24   : > { %v455_v25 = vadd.f32 %v454_v19, %v453_v17  ;;  %v400_v19 = vld [vmem:[%s1693_s18 + $0x90] sm:$0xff] }
  0x25   : > { %v1423_v26 = vpop.eup %1422  ;;  %v448_v27 = vadd.f32 %v447_v23, %v446_v18  ;;  %v397_v18 = vld [vmem:[%s1693_s18 + $0x78] sm:$0xff] }
  0x26   : > { %v1425_v29 = vpop.eup %1424  ;;  %v456_v30 = vrot.slane %v455_v25, 1  ;;  %v1071_v31 = vrot.slane %v1423_v26, %v1664_v22  ;;  %v404_v26 = vld [vmem:[%s1693_s18 + $0xb0] sm:$0xff] }
  0x27   : > { %v1075_v33 = vrot.slane %v1425_v29, %v1664_v22  ;;  %v449_v34 = vrot.slane %v448_v27, 1  ;;  %v403_v29 = vld [vmem:[%s1693_s18 + $0xa8] sm:$0xff] }
  0x28   : > { %v457_v35 = vadd.f32 %v456_v30, %v455_v25  ;;  %v1078_v36 = vmul.f32 %v1071_v31, %v372_v6  ;;  %v1079_v37 = vmul.f32 %v1071_v31, %v373_v7  ;;  %v401_v25 = vld [vmem:[%s1693_s18 + $0x98] sm:$0xff]  ;;  %v406_v30 = vld [vmem:[%s1693_s18 + $0xc0] sm:$0xff] }
  0x29   : > { %v1080_v38 = vmul.f32 %v1075_v33, %v374_v4  ;;  %v1081_v39 = vmul.f32 %v1075_v33, %v375_v5  ;;  %v450_v40 = vadd.f32 %v449_v34, %v448_v27  ;;  %v389_v4 = vld [vmem:[%s1693_s18 + $0x38] sm:$0xff]  ;;  %v392_v5 = vld [vmem:[%s1693_s18 + $0x50] sm:$0xff] }
  0x2a   : > { %490 = vxpose.xlu1.b32.start.end [1/1] (short) %v457_v35, 128  ;;  %v1082_v41 = vmin.f32 %v1078_v36, 1.0  ;;  %v1083_v42 = vmin.f32 %v1079_v37, 1.0  ;;  %v405_v31 = vld [vmem:[%s1693_s18 + $0xb8] sm:$0xff]  ;;  %v408_v34 = vld [vmem:[%s1693_s18 + $0xd0] sm:$0xff]  ;;  %v407_v35 = vld [vmem:[%s1693_s18 + $0xc8] sm:$0xff] }
  0x2b   : > { %v1084_v43 = vmin.f32 %v1080_v38, 1.0  ;;  %v1085_v44 = vmin.f32 %v1081_v39, 1.0  ;;  %458 = vxpose.xlu0.b32.start.end [1/1] (short) %v450_v40, 128  ;;  %v410_v36 = vld [vmem:[%s1693_s18 + $0xe0] sm:$0xff]  ;;  %v409_v39 = vld [vmem:[%s1693_s18 + $0xd8] sm:$0xff]  ;;  %v412_v40 = vld [vmem:[%s1693_s18 + $0xf0] sm:$0xff] }
  0x2c   : > { %v1100_v45 = vsel %vm1098_vm9, 0.0, %v1082_v41  ;;  %v1101_v46 = vsel %vm1098_vm9, 0.0, %v1083_v42  ;;  %v411_v41 = vld [vmem:[%s1693_s18 + $0xe8] sm:$0xff] }
  0x2d   : > { %v1102_v47 = vsel %vm1099_vm10, 0.0, %v1084_v43  ;;  %v1103_v48 = vsel %vm1099_vm10, 0.0, %v1085_v44  ;;  %1104 = vst [vmem:[%s1683_s15] sm:$0xff] %v1100_v45  ;;  %1105 = vst [vmem:[%s1683_s15 + $0x8] sm:$0xff] %v1101_v46  ;;  %v413_v44 = vld [vmem:[%s1693_s18 + $0xf8] sm:$0xff] }
  0x2e   : > { %1106 = vst [vmem:[%s1683_s15 + $0x10] sm:$0xff] %v1102_v47  ;;  %1107 = vst [vmem:[%s1683_s15 + $0x18] sm:$0xff] %v1103_v48 }
  0x48   : > { %1417 = vset.pattern.permute.xlu1 %v1545_v20 }
  0x54   : > { %1418 = vset.pattern.permute.xlu0 %v1546_v49 }
  0x8d   : > { %440 = vadd.xlane.f32.xlu1 %v434_v10  ;;  %v393_v10 = vld [vmem:[%s1693_s18 + $0x58] sm:$0xff] }
  0x91   : > { %442 = vadd.xlane.f32.xlu1 %v435_v9  ;;  %v394_v9 = vld [vmem:[%s1693_s18 + $0x60] sm:$0xff] }
  0x94   : > { %436 = vadd.xlane.f32.xlu0 %v432_v13  ;;  %v396_v13 = vld [vmem:[%s1693_s18 + $0x70] sm:$0xff] }
  0x98   : > { %438 = vadd.xlane.f32.xlu0 %v433_v11 }
  0xa2   : > { %549 = vperm.xlu1 %1417, %v377_v50  }
  0xa6   : > { %554 = vperm.xlu1 %1417, %v378_v51   ;;  %v1697_v55 = vpop.trf.xlu1 }
  0xa7   : > { %v1703_v59 = vpop.trf.xlu0 }
  0xaa   : > { %559 = vperm.xlu1 %1417, %v379_v52   ;;  %v1705_v60 = vpop.trf.xlu1 }
  0xab   : > { %v1710_v0 = vpop.trf.xlu0 }
  0xae   : > { %567 = vperm.xlu0 %1418, %v376_v53   ;;  %1419 = vset.pattern.permute.xlu1 %v1546_v49  ;;  %v1712_v2 = vpop.trf.xlu1 }
  0xaf   : > { %571 = vperm.xlu1 %1419, %v377_v50   ;;  %v1717_v6 = vpop.trf.xlu0 }
  0xb2   : > { %579 = vperm.xlu0 %1418, %v379_v52   ;;  %v1719_v7 = vpop.trf.xlu1 }
  0xb3   : > { %575 = vperm.xlu1 %1419, %v378_v51   ;;  %v477_v11 = vpop.trf.xlu0 }
  0xb6   : > { %1420 = vset.pattern.permute.xlu0 %v1545_v20  ;;  %v1724_v12 = vpop.trf.xlu1 }
  0xb7   : > { %544 = vperm.xlu0 %1420, %v376_v53   ;;  %1421 = vset.pattern.permute.xlu1 %v1545_v20  ;;  %v478_v16 = vpop.trf.xlu0  ;;  %v399_v20 = vld [vmem:[%s1693_s18 + $0x88] sm:$0xff]  ;;  %s1547_s18 = smov [#allocation2]  }
  0xb8   : > { %608 = vperm.xlu1 %1421, %v382_v54   ;;  %s1430_s13 = sshll.u32 %s1547_s18, 4  ;;  %s1431_s13 = int_to_ptr.vmem [resolvable:$false] %s1430_s13 }
  0xb9   : > { %s1432_s19 = scalar_lea.vmem %s1431_s13, 1024  ;;  %p1433_p0 = scmp.lt.s32.totalorder %s1815_s21, %s1431_s13 }
  0xba   : > { %v1729_v17 = vpop.trf.xlu1  ;;  %p1434_p1 = scmp.lt.s32.totalorder %s1432_s19, %s1426_s17 }
  0xbb   : > { %613 = vperm.xlu0 %1420, %v383_v56   ;;  %v479_v21 = vpop.trf.xlu0 }
  0xbc   : > { %618 = vperm.xlu1 %1421, %v384_v57   ;;  %p1435_p2 = por %p1434_p1, %p1433_p0 }
  0xbe   : > { %v1734_v23 = vpop.trf.xlu1  ;;  %p1436_p3 = pnand %p1435_p2, %p1429_p13 }
  0xbf   : > { %628 = vperm.xlu0 %1420, %v386_v58   ;;  %v480_v27 = vpop.trf.xlu0 }
  0xc0   : > { %623 = vperm.xlu1 %1421, %v385_v61  }
  0xc2   : > { %v1739_v28 = vpop.trf.xlu1 }
  0xc3   : > { %638 = vperm.xlu0 %1420, %v388_v62   ;;  %v481_v32 = vpop.trf.xlu0 }
  0xc4   : > { %633 = vperm.xlu1 %1421, %v387_v63   ;;  %v524_v63 = vsub.s32 2, %v1643_v1 }
  0xc6   : > { %v1744_v33 = vpop.trf.xlu1 }
  0xc7   : > { %648 = vperm.xlu0 %1420, %v390_v3   ;;  %v482_v37 = vpop.trf.xlu0 }
  0xc8   : > { %643 = vperm.xlu1 %1421, %v389_v4   ;;  %v592_v4 = vsub.s32 4, %v1643_v1 }
  0xca   : > { %v1749_v38 = vpop.trf.xlu1 }
  0xcb   : > { %658 = vperm.xlu0 %1420, %v392_v5   ;;  %v483_v42 = vpop.trf.xlu0 }
  0xcc   : > { %653 = vperm.xlu1 %1421, %v391_v8  }
  0xce   : > { %v516_v43 = vpop.trf.xlu1 }
  0xcf   : > { %668 = vperm.xlu0 %1420, %v394_v9   ;;  %v484_v45 = vpop.trf.xlu0 }
  0xd0   : > { %663 = vperm.xlu1 %1421, %v393_v10  }
  0xd2   : > { %v1756_v46 = vpop.trf.xlu1 }
  0xd3   : > { %678 = vperm.xlu0 %1420, %v396_v13   ;;  %v485_v47 = vpop.trf.xlu0 }
  0xd4   : > { %673 = vperm.xlu1 %1421, %v395_v14  }
  0xd6   : > { %v1760_v48 = vpop.trf.xlu1 }
  0xd7   : > { %688 = vperm.xlu0 %1420, %v398_v15   ;;  %v486_v49 = vpop.trf.xlu0 }
  0xd8   : > { %683 = vperm.xlu1 %1421, %v397_v18  }
  0xda   : > { %v1762_v50 = vpop.trf.xlu1 }
  0xdb   : > { %698 = vperm.xlu0 %1420, %v400_v19   ;;  %v487_v51 = vpop.trf.xlu0 }
  0xdc   : > { %693 = vperm.xlu1 %1421, %v399_v20  }
  0xde   : > { %v1764_v52 = vpop.trf.xlu1 }
  0xdf   : > { %708 = vperm.xlu0 %1420, %v402_v24   ;;  %v488_v53 = vpop.trf.xlu0 }
  0xe0   : > { %703 = vperm.xlu1 %1421, %v401_v25  }
  0xe2   : > { %v1766_v54 = vpop.trf.xlu1 }
  0xe3   : > { %718 = vperm.xlu0 %1420, %v404_v26   ;;  %v489_v56 = vpop.trf.xlu0 }
  0xe4   : > { %713 = vperm.xlu1 %1421, %v403_v29  }
  0xe7   : > { %728 = vperm.xlu0 %1420, %v406_v30  }
  0xe8   : > { %723 = vperm.xlu1 %1421, %v405_v31  }
  0xeb   : > { %738 = vperm.xlu0 %1420, %v408_v34  }
  0xec   : > { %733 = vperm.xlu1 %1421, %v407_v35  }
  0xef   : > { %748 = vperm.xlu0 %1420, %v410_v36  }
  0xf0   : > { %743 = vperm.xlu1 %1421, %v409_v39  }
  0xf3   : > { %758 = vperm.xlu0 %1420, %v412_v40  }
  0xf4   : > { %753 = vperm.xlu1 %1421, %v411_v41  }
  0xf7   : > { %804 = vperm.xlu0 %1420, %v1703_v59  }
  0xf8   : > { %763 = vperm.xlu1 %1421, %v413_v44  }
  0xfb   : > { %814 = vperm.xlu0 %1420, %v1717_v6  }
  0xfc   : > { %809 = vperm.xlu1 %1421, %v1710_v0  }
  0xff   : > { %824 = vperm.xlu0 %1420, %v478_v16  }
 0x100   : > { %819 = vperm.xlu1 %1421, %v477_v11  }
 0x103   : > { %834 = vperm.xlu0 %1420, %v480_v27   ;;  %v768_v27 = vsub.s32 5, %v1643_v1 }
 0x104   : > { %829 = vperm.xlu1 %1421, %v479_v21  }
 0x107   : > { %844 = vperm.xlu0 %1420, %v482_v37  }
 0x108   : > { %839 = vperm.xlu1 %1421, %v481_v32  }
 0x10b   : > { %854 = vperm.xlu0 %1420, %v484_v45  }
 0x10c   : > { %849 = vperm.xlu1 %1421, %v483_v42  }
 0x10f   : > { %864 = vperm.xlu0 %1420, %v486_v49  }
 0x110   : > { %859 = vperm.xlu1 %1421, %v485_v47  }
 0x113   : > { %874 = vperm.xlu0 %1420, %v488_v53  }
 0x114   : > { %869 = vperm.xlu1 %1421, %v487_v51  }
 0x116   : > { %v441_v57 = vpop.xlane.xlu1 %440 }
 0x117   : > { %884 = vperm.xlu0 %1420, %v1697_v55   ;;  %v534_v55 = vsub.s32 3, %v1643_v1 }
 0x118   : > { %879 = vperm.xlu1 %1421, %v489_v56  }
 0x11a   : > { %v443_v58 = vpop.xlane.xlu1 %442 }
 0x11b   : > { %894 = vperm.xlu0 %1420, %v1712_v2   ;;  %v538_v2 = vsub.s32 1, %v1643_v1 }
 0x11c   : > { %889 = vperm.xlu1 %1421, %v1705_v60   ;;  %v1781_v60 = vld [vmem:[%s2136_s4] sm:$0xff] }
 0x11d   : > { %v437_v59 = vpop.xlane.xlu0 %436  ;;  %v525_v5 = vrot.slane %v1781_v60, %v524_v63  ;;  %v535_v6 = vrot.slane %v1781_v60, %v534_v55  ;;  %v539_v8 = vrot.slane %v1781_v60, %v538_v2  ;;  %v593_v11 = vrot.slane %v1781_v60, %v592_v4 }
 0x11e   : > { %v550_v61 = vpop.permute.xlu1 %549  ;;  %v1807_v36 = vrot.slane %v1781_v60, %v768_v27 }
 0x11f   : > { %904 = vperm.xlu0 %1420, %v1724_v12   ;;  %v563_v12 = vmul.f32 %v550_v61, %v525_v5  ;;  %v540_v15 = vsel %vm418_vm0, %v535_v6, %v539_v8  ;;  %v597_v25 = vmul.f32 %v593_v11, %v443_v58  ;;  %v594_v37 = vmul.f32 %v593_v11, %v437_v59 }
 0x120   : > { %899 = vperm.xlu1 %1421, %v1719_v7   ;;  %v529_v7 = vrot.slane %v1781_v60, %v1664_v22 }
 0x121   : > { %v439_v0 = vpop.xlane.xlu0 %438 }
 0x122   : > { %v555_v62 = vpop.permute.xlu1 %554  ;;  %v530_v14 = vsel %vm418_vm0, %v525_v5, %v529_v7  ;;  %v595_v22 = vmul.f32 %v593_v11, %v439_v0 }
 0x123   : > { %914 = vperm.xlu0 %1420, %v1734_v23   ;;  %v564_v21 = vmul.f32 %v555_v62, %v530_v14 }
 0x124   : > { %909 = vperm.xlu1 %1421, %v1729_v17  }
 0x126   : > { %v560_v3 = vpop.permute.xlu1 %559 }
 0x127   : > { %924 = vperm.xlu0 %1420, %v1744_v33   ;;  %v565_v18 = vmul.f32 %v560_v3, %v525_v5 }
 0x128   : > { %919 = vperm.xlu1 %1421, %v1739_v28   ;;  %v596_v28 = vmul.f32 %v593_v11, %v441_v57 }
 0x129   : > { %v568_v9 = vpop.permute.xlu0 %567 }
 0x12a   : > { %v572_v10 = vpop.permute.xlu1 %571  ;;  %v582_v32 = vmul.f32 %v568_v9, %v540_v15 }
 0x12b   : > { %v583_v13 = vmul.f32 %v572_v10, %v535_v6  ;;  %934 = vperm.xlu0 %1420, %v516_v43  }
 0x12c   : > { %929 = vperm.xlu1 %1421, %v1749_v38  }
 0x12d   : > { %v587_v16 = vadd.f32 %v583_v13, %v563_v12  ;;  %v580_v17 = vpop.permute.xlu0 %579 }
 0x12e   : > { %v585_v19 = vmul.f32 %v580_v17, %v535_v6  ;;  %v576_v20 = vpop.permute.xlu1 %575 }
 0x12f   : > { %v599_v23 = vadd.f32 %v595_v22, %v587_v16  ;;  %v584_v24 = vmul.f32 %v576_v20, %v540_v15  ;;  %944 = vperm.xlu0 %1420, %v1760_v48  }
 0x130   : > { %v589_v26 = vadd.f32 %v585_v19, %v565_v18  ;;  %939 = vperm.xlu1 %1421, %v1756_v46  }
 0x131   : > { %603 = vst [vmem:[%s328_s20 + $0x8] sm:$0xff] %v599_v23  ;;  %v588_v29 = vadd.f32 %v584_v24, %v564_v21 }
 0x132   : > { %v601_v30 = vadd.f32 %v597_v25, %v589_v26  ;;  %v545_v31 = vpop.permute.xlu0 %544 }
 0x133   : > { %v600_v33 = vadd.f32 %v596_v28, %v588_v29  ;;  %v562_v34 = vmul.f32 %v545_v31, %v530_v14  ;;  %954 = vperm.xlu0 %1420, %v1764_v52   ;;  %v1803_v35 = vpop.permute.xlu1 %608 }
 0x134   : > { %605 = vst [vmem:[%s328_s20 + $0x18] sm:$0xff] %v601_v30  ;;  %949 = vperm.xlu1 %1421, %v1762_v50  }
 0x135   : > { %604 = vst [vmem:[%s328_s20 + $0x10] sm:$0xff] %v600_v33  ;;  %v586_v38 = vadd.f32 %v582_v32, %v562_v34 }
 0x136   : > { %v614_v39 = vpop.permute.xlu0 %613 }
 0x137   : > { %v598_v40 = vadd.f32 %v594_v37, %v586_v38  ;;  %v1810_v41 = vmul.f32 %v1807_v36, %v614_v39  ;;  %v1812_v42 = vpop.permute.xlu1 %618 }
 0x138   : > { %959 = vperm.xlu1 %1421, %v1766_v54  }
 0x139   : > { %602 = vst [vmem:[%s328_s20] sm:$0xff] %v598_v40 }
 0x13a   : > { %v629_v43 = vpop.permute.xlu0 %628 }
 0x13b   : > { %v1818_v44 = vmul.f32 %v1807_v36, %v629_v43  ;;  %v624_v45 = vpop.permute.xlu1 %623 }
 0x13c   : > { %v1821_v46 = vmul.f32 %v1807_v36, %v624_v45 }
 0x13e   : > { %v639_v47 = vpop.permute.xlu0 %638 }
 0x13f   : > { %1439 = shalt.err (!%p1436_p3)
}
 0x140   : > { %s1440_s20 = scalar_lea.hbm %s1829_s14, 512  ;;  %s1444_s18 = scalar_lea.hbm %s2137_s5, 1024 }
 0x141   : > { %p1441_p4 = scmp.ne.s32.totalorder %s1829_s14, %s1440_s20  ;;  %p1445_p9 = scmp.lt.s32.totalorder %s1829_s14, %s2137_s5 }
 0x142   : > { %p1446_p10 = scmp.lt.s32.totalorder %s1444_s18, %s1440_s20 }
 0x143   : > { %p1442_p7 = pnand %p1441_p4, %p1632_p5 }
 0x144   : > { %p1447_p11 = por %p1446_p10, %p1445_p9 }
 0x145   : > { %p1443_p8 = pneg %p1442_p7 }
 0x147   : > { %p1448_p12 = pnand %p1447_p11, %p1443_p8 }
 0x149   : > { %1451 = shalt.err (!%p1448_p12)
}
 0x14a   : > { %s2142_s17 = smov 128   ;;  %s2144_s13 = smov 8   ;;  %v1858_v48 = vmul.f32 %v1807_v36, %v639_v47  ;;  %v634_v49 = vpop.permute.xlu1 %633  ;;  %v649_v51 = vpop.permute.xlu0 %648  ;;  %v964_v30 = vsub.s32 6, %v1643_v1  ;;  %v770_v43 = vmul.f32 %v1807_v36, %v1803_v35 }
 0x14b   : > { %1363 = dma.vmem_to_hbm [thread:$0]  (%p1632_p5), %s1815_s21, 512, %s1829_s14, %s1109_s16, %s2142_s17, %s2142_s17, %s2144_s13   ;;  %v1861_v50 = vmul.f32 %v1807_v36, %v634_v49  ;;  %v1864_v52 = vmul.f32 %v1807_v36, %v649_v51 }
 0x14c   : > { %v1931_v37 = vrot.slane %v1781_v60, %v964_v30  ;;  %s1328_s29 = sshll.u32 %s1678_s8, 8  ;;  %s1113_s8 = sand.u32 1, %s1613_s28  }
 0x14d   : > { %s1948_s21 = scalar_lea.vmem [#allocation4], %s1328_s29  ;;  %s1360_s22 = sshll.u32 %s1613_s28, 12 }
 0x14e   : > { %v644_v53 = vpop.permute.xlu1 %643  ;;  %v659_v56 = vpop.permute.xlu0 %658  ;;  %s1150_s14 = sshll.u32 %s1948_s21, 4  ;;  %s1167_s16 = sshll.u32 %s1683_s15, 4  ;;  %s2051_s14 = int_to_ptr.vmem [resolvable:$true] %s1150_s14  ;;  %s2053_s16 = int_to_ptr.vmem [resolvable:$true] %s1167_s16 }
 0x14f   : > { %v1867_v54 = vmul.f32 %v1807_v36, %v644_v53  ;;  %v1870_v57 = vmul.f32 %v1807_v36, %v659_v56  ;;  %v772_v53 = vmul.f32 %v1807_v36, %v1812_v42  ;;  %s2049_s23 = scalar_lea.hbm %s2138_s6, %s1360_s22  ;;  %s2148_s9 = sshll.u32 %s1613_s28, 9 }
 0x150   : > { %s2060_s29 = scalar_lea.hbm %s2139_s7, %s2148_s9  ;;  %s2063_s17 = scalar_lea.sflag [#allocation5], %s1113_s8 }
 0x151   : > { %s1452_s13 = scalar_lea.vmem %s2051_s14, 4096  ;;  %s1550_s22 = smov [#allocation4]  }
 0x152   : > { %v654_v58 = vpop.permute.xlu1 %653  ;;  %v669_v61 = vpop.permute.xlu0 %668  ;;  %p1453_p13 = scmp.ne.s32.totalorder %s2051_s14, %s1452_s13  ;;  %s1456_s19 = sshll.u32 %s1550_s22, 4  ;;  %s1457_s19 = int_to_ptr.vmem [resolvable:$false] %s1456_s19 }
 0x153   : > { %v1873_v59 = vmul.f32 %v1807_v36, %v654_v58  ;;  %v1876_v62 = vmul.f32 %v1807_v36, %v669_v61  ;;  %s1458_s20 = scalar_lea.vmem %s1457_s19, 8192  ;;  %p1459_p2 = scmp.lt.s32.totalorder %s2051_s14, %s1457_s19 }
 0x154   : > { %p1454_p0 = pnand %p1453_p13, %p1632_p5  ;;  %p1460_p3 = scmp.lt.s32.totalorder %s1458_s20, %s1452_s13 }
 0x156   : > { %v664_v63 = vpop.permute.xlu1 %663  ;;  %v679_v55 = vpop.permute.xlu0 %678  ;;  %p1455_p1 = pneg %p1454_p0  ;;  %p1461_p4 = por %p1460_p3, %p1459_p2 }
 0x157   : > { %v1879_v0 = vmul.f32 %v1807_v36, %v664_v63  ;;  %v1882_v2 = vmul.f32 %v1807_v36, %v679_v55 }
 0x158   : > { %p1462_p7 = pnand %p1461_p4, %p1455_p1 }
 0x15a   : > { %v674_v3 = vpop.permute.xlu1 %673  ;;  %v689_v5 = vpop.permute.xlu0 %688 }
 0x15b   : > { %v1885_v4 = vmul.f32 %v1807_v36, %v674_v3  ;;  %v1888_v6 = vmul.f32 %v1807_v36, %v689_v5 }
 0x15e   : > { %v684_v7 = vpop.permute.xlu1 %683  ;;  %v699_v9 = vpop.permute.xlu0 %698 }
 0x15f   : > { %v1891_v8 = vmul.f32 %v1807_v36, %v684_v7  ;;  %v1894_v10 = vmul.f32 %v1807_v36, %v699_v9 }
 0x162   : > { %v694_v11 = vpop.permute.xlu1 %693  ;;  %v709_v13 = vpop.permute.xlu0 %708 }
 0x163   : > { %v1897_v12 = vmul.f32 %v1807_v36, %v694_v11  ;;  %v1900_v14 = vmul.f32 %v1807_v36, %v709_v13 }
 0x166   : > { %v704_v15 = vpop.permute.xlu1 %703  ;;  %v719_v16 = vpop.permute.xlu0 %718 }
 0x167   : > { %v1903_v22 = vmul.f32 %v1807_v36, %v704_v15  ;;  %v1906_v17 = vmul.f32 %v1807_v36, %v719_v16 }
 0x16a   : > { %v714_v18 = vpop.permute.xlu1 %713  ;;  %v729_v20 = vpop.permute.xlu0 %728 }
 0x16b   : > { %v1909_v19 = vmul.f32 %v1807_v36, %v714_v18  ;;  %v1912_v21 = vmul.f32 %v1807_v36, %v729_v20 }
 0x16e   : > { %v724_v23 = vpop.permute.xlu1 %723  ;;  %v739_v25 = vpop.permute.xlu0 %738 }
 0x16f   : > { %v1915_v24 = vmul.f32 %v1807_v36, %v724_v23  ;;  %v1918_v26 = vmul.f32 %v1807_v36, %v739_v25 }
 0x172   : > { %v734_v27 = vpop.permute.xlu1 %733  ;;  %v749_v29 = vpop.permute.xlu0 %748 }
 0x173   : > { %v1921_v28 = vmul.f32 %v1807_v36, %v734_v27  ;;  %v1925_v31 = vmul.f32 %v1807_v36, %v749_v29 }
 0x176   : > { %v744_v32 = vpop.permute.xlu1 %743  ;;  %v759_v34 = vpop.permute.xlu0 %758 }
 0x177   : > { %v1928_v33 = vmul.f32 %v1807_v36, %v744_v32  ;;  %v1934_v38 = vmul.f32 %v1807_v36, %v759_v34 }
 0x17a   : > { %v754_v39 = vpop.permute.xlu1 %753  ;;  %v805_v1 = vpop.permute.xlu0 %804 }
 0x17b   : > { %v1937_v40 = vmul.f32 %v1807_v36, %v754_v39  ;;  %v966_v45 = vmul.f32 %v1931_v37, %v805_v1 }
 0x17d   : > { %v998_v60 = vadd.f32 %v966_v45, %v770_v43 }
 0x17e   : > { %v764_v47 = vpop.permute.xlu1 %763  ;;  %v815_v51 = vpop.permute.xlu0 %814 }
 0x17f   : > { %v1944_v49 = vmul.f32 %v1807_v36, %v764_v47  ;;  %1030 = vst [vmem:[%s1948_s21] sm:$0xff] %v998_v60  ;;  %v968_v35 = vmul.f32 %v1931_v37, %v815_v51 }
 0x181   : > { %v1000_v61 = vadd.f32 %v968_v35, %v772_v53 }
 0x182   : > { %v810_v56 = vpop.permute.xlu1 %809  ;;  %v825_v55 = vpop.permute.xlu0 %824 }
 0x183   : > { %v967_v58 = vmul.f32 %v1931_v37, %v810_v56  ;;  %1032 = vst [vmem:[%s1948_s21 + $0x10] sm:$0xff] %v1000_v61  ;;  %v970_v36 = vmul.f32 %v1931_v37, %v825_v55 }
 0x185   : > { %v999_v63 = vadd.f32 %v967_v58, %v1810_v41  ;;  %v1002_v5 = vadd.f32 %v970_v36, %v1818_v44 }
 0x186   : > { %v820_v42 = vpop.permute.xlu1 %819  ;;  %v835_v9 = vpop.permute.xlu0 %834 }
 0x187   : > { %1031 = vst [vmem:[%s1948_s21 + $0x8] sm:$0xff] %v999_v63  ;;  %v969_v3 = vmul.f32 %v1931_v37, %v820_v42  ;;  %1034 = vst [vmem:[%s1948_s21 + $0x20] sm:$0xff] %v1002_v5  ;;  %v972_v11 = vmul.f32 %v1931_v37, %v835_v9 }
 0x189   : > { %v1001_v7 = vadd.f32 %v969_v3, %v1821_v46  ;;  %v1004_v15 = vadd.f32 %v972_v11, %v1858_v48 }
 0x18a   : > { %v830_v41 = vpop.permute.xlu1 %829  ;;  %v845_v18 = vpop.permute.xlu0 %844 }
 0x18b   : > { %1033 = vst [vmem:[%s1948_s21 + $0x18] sm:$0xff] %v1001_v7  ;;  %v971_v13 = vmul.f32 %v1931_v37, %v830_v41  ;;  %1036 = vst [vmem:[%s1948_s21 + $0x30] sm:$0xff] %v1004_v15  ;;  %v974_v44 = vmul.f32 %v1931_v37, %v845_v18 }
 0x18d   : > { %v1003_v16 = vadd.f32 %v971_v13, %v1861_v50  ;;  %v1006_v23 = vadd.f32 %v974_v44, %v1864_v52 }
 0x18e   : > { %v840_v46 = vpop.permute.xlu1 %839  ;;  %v855_v27 = vpop.permute.xlu0 %854 }
 0x18f   : > { %1035 = vst [vmem:[%s1948_s21 + $0x28] sm:$0xff] %v1003_v16  ;;  %v973_v20 = vmul.f32 %v1931_v37, %v840_v46  ;;  %1038 = vst [vmem:[%s1948_s21 + $0x40] sm:$0xff] %v1006_v23  ;;  %v976_v48 = vmul.f32 %v1931_v37, %v855_v27 }
 0x191   : > { %v1005_v25 = vadd.f32 %v973_v20, %v1867_v54  ;;  %v1008_v30 = vadd.f32 %v976_v48, %v1870_v57 }
 0x192   : > { %v850_v50 = vpop.permute.xlu1 %849  ;;  %v865_v34 = vpop.permute.xlu0 %864 }
 0x193   : > { %1037 = vst [vmem:[%s1948_s21 + $0x38] sm:$0xff] %v1005_v25  ;;  %v975_v29 = vmul.f32 %v1931_v37, %v850_v50  ;;  %1040 = vst [vmem:[%s1948_s21 + $0x50] sm:$0xff] %v1008_v30  ;;  %v978_v52 = vmul.f32 %v1931_v37, %v865_v34 }
 0x195   : > { %v1007_v32 = vadd.f32 %v975_v29, %v1873_v59  ;;  %v1010_v1 = vadd.f32 %v978_v52, %v1876_v62 }
 0x196   : > { %v860_v54 = vpop.permute.xlu1 %859  ;;  %v875_v45 = vpop.permute.xlu0 %874 }
 0x197   : > { %1039 = vst [vmem:[%s1948_s21 + $0x48] sm:$0xff] %v1007_v32  ;;  %v977_v39 = vmul.f32 %v1931_v37, %v860_v54  ;;  %1042 = vst [vmem:[%s1948_s21 + $0x60] sm:$0xff] %v1010_v1  ;;  %v980_v57 = vmul.f32 %v1931_v37, %v875_v45 }
 0x199   : > { %v1009_v43 = vadd.f32 %v977_v39, %v1879_v0  ;;  %v1012_v60 = vadd.f32 %v980_v57, %v1882_v2 }
 0x19a   : > { %v870_v59 = vpop.permute.xlu1 %869  ;;  %v885_v53 = vpop.permute.xlu0 %884 }
 0x19b   : > { %1041 = vst [vmem:[%s1948_s21 + $0x58] sm:$0xff] %v1009_v43  ;;  %v979_v47 = vmul.f32 %v1931_v37, %v870_v59  ;;  %1044 = vst [vmem:[%s1948_s21 + $0x70] sm:$0xff] %v1012_v60  ;;  %v982_v62 = vmul.f32 %v1931_v37, %v885_v53 }
 0x19d   : > { %v1011_v51 = vadd.f32 %v979_v47, %v1885_v4  ;;  %v1014_v56 = vadd.f32 %v982_v62, %v1888_v6 }
 0x19e   : > { %v880_v0 = vpop.permute.xlu1 %879  ;;  %v895_v61 = vpop.permute.xlu0 %894 }
 0x19f   : > { %1043 = vst [vmem:[%s1948_s21 + $0x68] sm:$0xff] %v1011_v51  ;;  %v981_v35 = vmul.f32 %v1931_v37, %v880_v0  ;;  %1046 = vst [vmem:[%s1948_s21 + $0x80] sm:$0xff] %v1014_v56  ;;  %v984_v2 = vmul.f32 %v1931_v37, %v895_v61 }
 0x1a1   : > { %v1013_v58 = vadd.f32 %v981_v35, %v1891_v8  ;;  %v1016_v55 = vadd.f32 %v984_v2, %v1894_v10 }
 0x1a2   : > { %v890_v4 = vpop.permute.xlu1 %889  ;;  %v905_v42 = vpop.permute.xlu0 %904 }
 0x1a3   : > { %1045 = vst [vmem:[%s1948_s21 + $0x78] sm:$0xff] %v1013_v58  ;;  %v983_v63 = vmul.f32 %v1931_v37, %v890_v4  ;;  %1048 = vst [vmem:[%s1948_s21 + $0x90] sm:$0xff] %v1016_v55  ;;  %v986_v6 = vmul.f32 %v1931_v37, %v905_v42 }
 0x1a5   : > { %v1015_v36 = vadd.f32 %v983_v63, %v1897_v12  ;;  %v1018_v5 = vadd.f32 %v986_v6, %v1900_v14 }
 0x1a6   : > { %v900_v8 = vpop.permute.xlu1 %899  ;;  %v915_v9 = vpop.permute.xlu0 %914 }
 0x1a7   : > { %1047 = vst [vmem:[%s1948_s21 + $0x88] sm:$0xff] %v1015_v36  ;;  %v985_v3 = vmul.f32 %v1931_v37, %v900_v8  ;;  %1050 = vst [vmem:[%s1948_s21 + $0xa0] sm:$0xff] %v1018_v5  ;;  %v988_v10 = vmul.f32 %v1931_v37, %v915_v9 }
 0x1a9   : > { %v1017_v7 = vadd.f32 %v985_v3, %v1903_v22  ;;  %v1020_v41 = vadd.f32 %v988_v10, %v1906_v17 }
 0x1aa   : > { %v910_v12 = vpop.permute.xlu1 %909  ;;  %v925_v15 = vpop.permute.xlu0 %924 }
 0x1ab   : > { %1049 = vst [vmem:[%s1948_s21 + $0x98] sm:$0xff] %v1017_v7  ;;  %v987_v11 = vmul.f32 %v1931_v37, %v910_v12  ;;  %1052 = vst [vmem:[%s1948_s21 + $0xb0] sm:$0xff] %v1020_v41  ;;  %v990_v14 = vmul.f32 %v1931_v37, %v925_v15 }
 0x1ad   : > { %v1019_v13 = vadd.f32 %v987_v11, %v1909_v19  ;;  %v1022_v18 = vadd.f32 %v990_v14, %v1912_v21 }
 0x1ae   : > { %v920_v22 = vpop.permute.xlu1 %919  ;;  %v935_v46 = vpop.permute.xlu0 %934 }
 0x1af   : > { %1051 = vst [vmem:[%s1948_s21 + $0xa8] sm:$0xff] %v1019_v13  ;;  %v989_v16 = vmul.f32 %v1931_v37, %v920_v22  ;;  %1054 = vst [vmem:[%s1948_s21 + $0xc0] sm:$0xff] %v1022_v18  ;;  %v992_v17 = vmul.f32 %v1931_v37, %v935_v46 }
 0x1b1   : > { %v1021_v44 = vadd.f32 %v989_v16, %v1915_v24  ;;  %v1024_v23 = vadd.f32 %v992_v17, %v1918_v26 }
 0x1b2   : > { %v930_v19 = vpop.permute.xlu1 %929  ;;  %v945_v27 = vpop.permute.xlu0 %944 }
 0x1b3   : > { %1053 = vst [vmem:[%s1948_s21 + $0xb8] sm:$0xff] %v1021_v44  ;;  %v991_v20 = vmul.f32 %v1931_v37, %v930_v19  ;;  %1056 = vst [vmem:[%s1948_s21 + $0xd0] sm:$0xff] %v1024_v23  ;;  %v994_v21 = vmul.f32 %v1931_v37, %v945_v27 }
 0x1b5   : > { %v1023_v25 = vadd.f32 %v991_v20, %v1921_v28  ;;  %v1026_v50 = vadd.f32 %v994_v21, %v1925_v31 }
 0x1b6   : > { %v940_v24 = vpop.permute.xlu1 %939  ;;  %v955_v29 = vpop.permute.xlu0 %954 }
 0x1b7   : > { %1055 = vst [vmem:[%s1948_s21 + $0xc8] sm:$0xff] %v1023_v25  ;;  %v993_v48 = vmul.f32 %v1931_v37, %v940_v24  ;;  %1058 = vst [vmem:[%s1948_s21 + $0xe0] sm:$0xff] %v1026_v50  ;;  %v996_v28 = vmul.f32 %v1931_v37, %v955_v29 }
 0x1b9   : > { %v1025_v26 = vadd.f32 %v993_v48, %v1928_v33  ;;  %v1028_v34 = vadd.f32 %v996_v28, %v1934_v38 }
 0x1ba   : > { %v950_v30 = vpop.permute.xlu1 %949 }
 0x1bb   : > { %1057 = vst [vmem:[%s1948_s21 + $0xd8] sm:$0xff] %v1025_v26  ;;  %v995_v32 = vmul.f32 %v1931_v37, %v950_v30  ;;  %1060 = vst [vmem:[%s1948_s21 + $0xf0] sm:$0xff] %v1028_v34 }
 0x1bd   : > { %v1027_v52 = vadd.f32 %v995_v32, %v1937_v40 }
 0x1be   : > { %v960_v31 = vpop.permute.xlu1 %959 }
 0x1bf   : > { %1059 = vst [vmem:[%s1948_s21 + $0xe8] sm:$0xff] %v1027_v52  ;;  %v997_v33 = vmul.f32 %v1931_v37, %v960_v31 }
 0x1c1   : > { %v1029_v54 = vadd.f32 %v997_v33, %v1944_v49 }
 0x1c3   : > { %1061 = vst [vmem:[%s1948_s21 + $0xf8] sm:$0xff] %v1029_v54 }
 0x1c4   : > { %1465 = shalt.err (!%p1462_p7)
}
 0x1c5   : > { %s1466_s28 = scalar_lea.hbm %s2049_s23, 4096  ;;  %s1470_s9 = scalar_lea.hbm %s2138_s6, 8192 }
 0x1c6   : > { %p1467_p8 = scmp.ne.s32.totalorder %s2049_s23, %s1466_s28  ;;  %p1471_p11 = scmp.lt.s32.totalorder %s2049_s23, %s2138_s6 }
 0x1c7   : > { %p1472_p12 = scmp.lt.s32.totalorder %s1470_s9, %s1466_s28 }
 0x1c8   : > { %p1468_p9 = pnand %p1467_p8, %p1632_p5 }
 0x1c9   : > { %p1473_p13 = por %p1472_p12, %p1471_p11 }
 0x1ca   : > { %p1469_p10 = pneg %p1468_p9 }
 0x1cc   : > { %p1474_p0 = pnand %p1473_p13, %p1469_p10 }
 0x1ce   : > { %1477 = shalt.err (!%p1474_p0)
}
 0x1cf   : > { %s2149_s13 = smov 8   ;;  %s2150_s22 = smov 128  }
 0x1d0   : > { %1364 = dma.vmem_to_hbm [thread:$0]  (%p1632_p5), %s2051_s14, 4096, %s2049_s23, %s2063_s17, %s2150_s22, %s2150_s22, %s2149_s13  }
 0x1d1   : > { %s1478_s19 = scalar_lea.vmem %s2053_s16, 512  ;;  %s1551_s20 = smov [#allocation6]  }
 0x1d2   : > { %p1479_p1 = scmp.ne.s32.totalorder %s2053_s16, %s1478_s19  ;;  %s1482_s28 = sshll.u32 %s1551_s20, 4  ;;  %s1483_s28 = int_to_ptr.vmem [resolvable:$false] %s1482_s28 }
 0x1d3   : > { %s1484_s21 = scalar_lea.vmem %s1483_s28, 1024  ;;  %p1485_p4 = scmp.lt.s32.totalorder %s2053_s16, %s1483_s28 }
 0x1d4   : > { %p1480_p2 = pnand %p1479_p1, %p1632_p5  ;;  %p1486_p7 = scmp.lt.s32.totalorder %s1484_s21, %s1478_s19 }
 0x1d6   : > { %p1481_p3 = pneg %p1480_p2  ;;  %p1487_p8 = por %p1486_p7, %p1485_p4 }
 0x1d8   : > { %p1488_p9 = pnand %p1487_p8, %p1481_p3 }
 0x1da   : > { %1491 = shalt.err (!%p1488_p9)
}
 0x1db   : > { %s1492_s8 = scalar_lea.hbm %s2060_s29, 512  ;;  %s1496_s9 = scalar_lea.hbm %s2139_s7, 1024 }
 0x1dc   : > { %p1493_p10 = scmp.ne.s32.totalorder %s2060_s29, %s1492_s8  ;;  %p1497_p13 = scmp.lt.s32.totalorder %s2060_s29, %s2139_s7 }
 0x1dd   : > { %p1498_p0 = scmp.lt.s32.totalorder %s1496_s9, %s1492_s8 }
 0x1de   : > { %p1494_p11 = pnand %p1493_p10, %p1632_p5 }
 0x1df   : > { %p1499_p1 = por %p1498_p0, %p1497_p13 }
 0x1e0   : > { %p1495_p12 = pneg %p1494_p11 }
 0x1e2   : > { %p1500_p2 = pnand %p1499_p1, %p1495_p12 }
 0x1e4   : > { %1503 = shalt.err (!%p1500_p2)
}
 0x1e5   : > { %1365 = dma.vmem_to_hbm [thread:$0]  (%p1632_p5), %s2053_s16, 512, %s2060_s29, %s2063_s17, %s2150_s22, %s2150_s22, %s2149_s13  }
 0x1e6 PF: > { %p1379_p3 = scmp.ge.s32.totalorder %s1542_s27, 2  ;;  %s1182_s19 = sand.u32 1, %s1530_s24  }
 0x1e7   : > { %s1183_s20 = scalar_lea.sflag [#allocation3], %s1182_s19 }
 0x1e8   : > { %p1370_p4 = pnand %p1379_p3, %p1636_p6 }
 0x1ea   : > { %p1371_p7 = pneg %p1370_p4 }
 0x1ec   : > { %1521 = dma.done.wait (%p1371_p7), %s1183_s20, 512  }
 0x1ed   : > { %1523 = vsyncadd (%p1371_p7), %s1183_s20, 4294966784  ;;  %s2151_s11 = sadd.s32 4294967294, %s1542_s27  }
 0x1ee   : > { %s1191_s28 = sand.u32 1, %s2151_s11  }
 0x1ef   : > { %s1192_s21 = scalar_lea.sflag [#allocation5], %s1191_s28 }
 0x1f0   : > { %1525 = dma.done.wait (%p1371_p7), %s1192_s21, 4608  }
 0x1f1   : > { %1527 = vsyncadd (%p1371_p7), %s1192_s21, 4294962688  ;;  %p21_p5 = scmp.ge.s32.totalorder %s1617_s30, 4   ;;  %s2152_s24 = smov %s1534_s25 }
 0x1f2   : > { %s2153_s25 = smov %s1538_s26  ;;  %s2154_s26 = smov %s1630_s10 }
 0x1f3   : > { %s2155_s27 = smov %s1617_s30  ;;  %23 = sbr.rel (!%p21_p5) target bundleno = 5 (0x5), region = 116 }
 0x1f8   :  { %1206 = vsyncpa [#allocation3], 1 }
 0x1f9   :  { %1208 = vsyncpa [#allocation3 + $0x1], 1 }
 0x1fa   :  { %1209 = vsyncpa [#allocation5], 1 }
 0x1fb   :  { %1211 = vsyncpa [#allocation5 + $0x1], 1 }

</bundles_post_ra>
